<compile_context>
chip_gen: v5e
topology: v5e:2x2
jax: 0.10.0
libtpu: 0.0.40
codegen_flags: <defaults>
</compile_context>

<pallas_src>
import functools

import jax
import jax.numpy as jnp
import numpy as np
from jax import lax
from jax.experimental import pallas as pl
from jax.experimental.pallas import tpu as pltpu

# Keep the pure-JAX reference matmuls in full f32 so the tolerance check is
# about the kernel, not XLA's default bf16-pass matmul precision.
jax.config.update("jax_default_matmul_precision", "highest")


# ----------------------------- kernels ------------------------------------ #

def _soft_argmax_rows(f, px, py):
    """Channel-wise soft-argmax over the lane (H*W) axis.

    f:       (R, HW) f32 logits (R = keypoints/channels)
    px, py:  (1, HW) normalized x / y coordinates
    returns  (2, R)  rows = [expected_x; expected_y]
    """
    m = jnp.max(f, axis=-1, keepdims=True)        # (R, 1)   XLU reduce
    e = jnp.exp(f - m)                            # (R, HW)  EUP
    s = jnp.sum(e, axis=-1)                       # (R,)     XLU reduce
    ex = jnp.sum(e * px, axis=-1)                 # (R,)     VPU mul + XLU reduce
    ey = jnp.sum(e * py, axis=-1)                 # (R,)
    # Normalization folded into the 2*R outputs instead of an (R, HW) divide.
    # Exact divide: the approx EUP reciprocal (~2^-12 rel. error) is too coarse
    # for the 1e-5 tolerance check.
    inv_s = 1.0 / s
    return jnp.concatenate([(ex * inv_s)[None, :], (ey * inv_s)[None, :]], axis=0)


def _spatial_softmax_conv_kernel(x_ref, w_ref, pos_ref, out_ref, *, unroll):
    """x_ref: (bt, C, HW), w_ref: (K, C), pos_ref: (2, HW), out_ref: (bt, 2, K)."""
    w = w_ref[...]                                # hoisted, native dtype (MXU)
    px = pos_ref[0:1, :]                          # hoisted 2-D (1, HW) slices
    py = pos_ref[1:2, :]
    bt = x_ref.shape[0]

    def body(b, carry):
        # 1x1 conv == channel-mixing matmul; f32 accumulation on the MXU.
        # (Conv bias intentionally omitted: softmax over HW is invariant to it.)
        f = jnp.dot(w, x_ref[b], preferred_element_type=jnp.float32)   # (K, HW)
        out_ref[b] = _soft_argmax_rows(f, px, py).astype(out_ref.dtype)
        return carry

    # fori_loop bounds the (K, HW) f32 temps to a single iteration; unroll only
    # when the fully-unrolled footprint is tiny (lets the LLO scheduler overlap
    # the small back-to-back MXU matmuls across batch elements).
    lax.fori_loop(0, bt, body, 0, unroll=unroll)


def _spatial_softmax_noconv_kernel(x_ref, pos_ref, out_ref, *, unroll):
    """Same as above without the learnable 1x1 conv (num_kp is None)."""
    px = pos_ref[0:1, :]
    py = pos_ref[1:2, :]
    bt = x_ref.shape[0]

    def body(b, carry):
        # f32 for exp (no bf16 VPU/EUP on v5e).  A bf16 exp path on v6e/v7x
        # would halve the working set but changes rounding; kept in f32.
        f = x_ref[b].astype(jnp.float32)          # (C, HW)
        out_ref[b] = _soft_argmax_rows(f, px, py).astype(out_ref.dtype)
        return carry

    lax.fori_loop(0, bt, body, 0, unroll=unroll)


# ----------------------------- wrapper ------------------------------------ #

def make_pos_grid(h, w):
    """Lane-major coordinate grid, shape (2, H*W): row 0 = x, row 1 = y.

    Same values as the PyTorch module's (H*W, 2) `pos_grid` buffer, transposed
    so the spatial axis sits on TPU lanes (avoids the (HW,2)->(HW,128) pad).
    """
    pos_x, pos_y = np.meshgrid(np.linspace(-1.0, 1.0, w),
                               np.linspace(-1.0, 1.0, h))
    grid = np.stack([pos_x.reshape(-1), pos_y.reshape(-1)], axis=0)
    return jnp.asarray(grid, dtype=jnp.float32)


def _tpu_budget_info():
    """(per-core VMEM bytes, multi-TensorCore chip?) with safe fallbacks."""
    vmem = 128 * 1024 * 1024
    try:
        info = pltpu.get_tpu_info()
        vmem = int(getattr(info, "vmem_capacity_bytes", vmem)) or vmem
    except Exception:
        pass
    # v7x: 64 MiB VMEM per TensorCore, 2 TensorCores per chip.
    multi_tc = vmem <= 64 * 1024 * 1024
    try:
        if "v7" in jax.devices()[0].device_kind.lower():
            multi_tc = True
    except Exception:
        pass
    return vmem, multi_tc


def _pick_batch_tile(B, C, K, HW, itemsize, budget, multi_tc):
    """Largest batch tile that (a) fits `budget`, (b) divides B, and (c) only on
    multi-TC chips leaves >= 2 grid steps so both TensorCores get work."""
    rows = max(C, K)
    per_b = 2 * C * HW * itemsize + 2 * 2 * K * 4         # dbl-buffered in/out per elem
    fixed = (3 * rows * HW * 4                            # one iteration's f32 temps
             + 2 * 2 * HW * 4                             # pos grid (dbl-buffered)
             + 2 * K * C * itemsize)                      # weights (dbl-buffered)
    bt = max(1, min(B, (budget - fixed) // max(per_b, 1)))
    if multi_tc:
        while bt > 1 and (B + bt - 1) // bt < 2:
            bt -= 1
    while B % bt:
        bt -= 1
    return int(bt)


@jax.jit
def spatial_softmax(features, pos_grid, weight=None, bias=None):
    """features: (B, C, H, W) -> (B, K, 2) float32 keypoints.

    `bias` is accepted for API parity with the PyTorch module but is unused:
    softmax over H*W is exactly invariant to the per-channel conv bias.
    """
    del bias
    B, C, H, W = features.shape
    HW = H * W
    x = features.reshape(B, C, HW)

    if weight is not None:
        K = weight.shape[0]
        w2 = weight.reshape(K, C)                 # (K, C, 1, 1) -> (K, C), native dtype
    else:
        K = C

    itemsize = jnp.dtype(features.dtype).itemsize
    vmem_cap, multi_tc = _tpu_budget_info()
    # Tile budget ~30% of per-core VMEM (v5e/v6e ~38 MiB, v7x ~19 MiB); the
    # scoped-VMEM limit below is derived consistently (<= ~70% of physical).
    budget = max(8 * 1024 * 1024, min(int(vmem_cap * 0.30), 40 * 1024 * 1024))
    bt = _pick_batch_tile(B, C, K, HW, itemsize, budget, multi_tc)
    grid = (B // bt,)
    rows = max(C, K)

    # Unroll the per-batch loop only when the fully-unrolled f32 temp footprint
    # stays tiny (live ranges multiply by bt when unrolled; rolled keeps one).
    unroll = bool(bt <= 8 and 3 * rows * HW * 4 * bt <= 4 * 1024 * 1024)
    tmp_bytes = 3 * rows * HW * 4 * (bt if unroll else 1)

    vmem_est = (2 * bt * C * HW * itemsize                       # input block (dbl-buffered)
                + tmp_bytes                                      # f32 logits / exp temps
                + 2 * 2 * HW * 4                                 # pos grid
                + (2 * K * C * itemsize if weight is not None else 0)
                + 2 * bt * 2 * K * 4)                            # output block (dbl-buffered)
    cparams = dict(dimension_semantics=("parallel",))
    if vmem_est > 12 * 1024 * 1024:
        # Headroom for compiler scratch / second buffers, but stay well inside
        # physical VMEM: <= ~45 MiB on 64-MiB v7x, <= ~90 MiB on 128-MiB v5e/v6e.
        cparams["vmem_limit_bytes"] = int(min(vmem_est * 1.3, vmem_cap * 0.7))

    # TODO(synk): for feature maps where even bt=1 exceeds the VMEM budget, add
    # an "arbitrary" grid axis over HW chunks with flash-style running
    # (m, s, ex, ey) accumulators; and a second "parallel" rows axis so both
    # v7x TensorCores stay busy when the batch grid degenerates to one step.

    pos_spec = pl.BlockSpec((2, HW), lambda b: (0, 0))
    x_spec = pl.BlockSpec((bt, C, HW), lambda b: (b, 0, 0))
    out_spec = pl.BlockSpec((bt, 2, K), lambda b: (b, 0, 0))
    out_shape = jax.ShapeDtypeStruct((B, 2, K), jnp.float32)

    if weight is not None:
        out_2k = pl.pallas_call(
            functools.partial(_spatial_softmax_conv_kernel, unroll=unroll),
            out_shape=out_shape,
            grid=grid,
            in_specs=[x_spec,
                      pl.BlockSpec((K, C), lambda b: (0, 0)),
                      pos_spec],
            out_specs=out_spec,
            compiler_params=pltpu.CompilerParams(**cparams),
        )(x, w2, pos_grid)
    else:
        out_2k = pl.pallas_call(
            functools.partial(_spatial_softmax_noconv_kernel, unroll=unroll),
            out_shape=out_shape,
            grid=grid,
            in_specs=[x_spec, pos_spec],
            out_specs=out_spec,
            compiler_params=pltpu.CompilerParams(**cparams),
        )(x, pos_grid)

    # Lane-dense (B, 2, K) kernel output -> module's (B, K, 2) layout.
    return jnp.transpose(out_2k, (0, 2, 1))


# --------------------------- pure-JAX reference ---------------------------- #

def spatial_softmax_ref(features, pos_grid_2hw, weight=None, bias=None):
    B, C, H, W = features.shape
    f = features
    if weight is not None:
        K = weight.shape[0]
        f = jnp.einsum("kc,bchw->bkhw", weight.reshape(K, C), f) \
            + bias[None, :, None, None]
    else:
        K = C
    f = f.reshape(-1, H * W)
    attn = jax.nn.softmax(f, axis=-1)
    xy = attn @ pos_grid_2hw.T                    # (B*K, 2), matches module's pos_grid
    return xy.reshape(-1, K, 2)


# --------------------------------- main ------------------------------------ #

if __name__ == "__main__":
    B, C, H, W = 2, 4, 16, 16
    num_kp = 8

    key = jax.random.PRNGKey(0)
    k_feat, k_w, k_b = jax.random.split(key, 3)

    features = jax.random.normal(k_feat, (B, C, H, W), dtype=jnp.float32)

    # Deterministic Conv2d(C, num_kp, kernel_size=1) parameters (synthetic init).
    fan_in = C  # kernel_size = 1
    bound = 1.0 / np.sqrt(fan_in)
    weight = jax.random.uniform(k_w, (num_kp, C, 1, 1), jnp.float32, -bound, bound)
    bias = jax.random.uniform(k_b, (num_kp,), jnp.float32, -bound, bound)

    pos_grid = make_pos_grid(H, W)

    # Path with the learnable 1x1 conv (num_kp != None).
    out = jax.block_until_ready(spatial_softmax(features, pos_grid, weight, bias))
    ref = spatial_softmax_ref(features, pos_grid, weight, bias)
    assert out.shape == (B, num_kp, 2)
    np.testing.assert_allclose(np.asarray(out), np.asarray(ref), rtol=1e-5, atol=1e-5)

    # Path without the conv (num_kp is None).
    out2 = jax.block_until_ready(spatial_softmax(features, pos_grid))
    ref2 = spatial_softmax_ref(features, pos_grid)
    assert out2.shape == (B, C, 2)
    np.testing.assert_allclose(np.asarray(out2), np.asarray(ref2), rtol=1e-5, atol=1e-5)

    print("KERNEL_OK")
</pallas_src>

<mosaic_0001>
module attributes {stable_mosaic.version = 11 : i64} {
  func.func @_spatial_softmax_conv_kernel(%arg0: i32, %arg1: memref<2x4x256xf32, #tpu.memory_space<vmem>>, %arg2: memref<8x4xf32, #tpu.memory_space<vmem>>, %arg3: memref<2x256xf32, #tpu.memory_space<vmem>>, %arg4: memref<2x2x8xf32, #tpu.memory_space<vmem>>) attributes {dimension_semantics = [#tpu.dimension_semantics<parallel>], iteration_bounds = array<i64: 1>, scalar_prefetch = 0 : i64, scratch_operands = 0 : i64, tpu.core_type = #tpu.core_type<tc>, window_params = [{transform_indices = @transform_0, window_bounds = array<i64: 2, 4, 256>}, {pipeline_mode = #tpu.pipeline_mode<synchronous>, transform_indices = @transform_1, window_bounds = array<i64: 8, 4>}, {pipeline_mode = #tpu.pipeline_mode<synchronous>, transform_indices = @transform_2, window_bounds = array<i64: 2, 256>}, {transform_indices = @transform_3, window_bounds = array<i64: 2, 2, 8>}]} {
    %c0 = arith.constant 0 : index
    %c0_0 = arith.constant 0 : index
    %0 = vector.load %arg2[%c0, %c0_0] : memref<8x4xf32, #tpu.memory_space<vmem>>, vector<8x4xf32>
    %c0_1 = arith.constant 0 : index
    %c0_2 = arith.constant 0 : index
    %1 = vector.load %arg3[%c0_1, %c0_2] : memref<2x256xf32, #tpu.memory_space<vmem>>, vector<1x256xf32>
    %c1 = arith.constant 1 : index
    %c0_3 = arith.constant 0 : index
    %2 = vector.load %arg3[%c1, %c0_3] : memref<2x256xf32, #tpu.memory_space<vmem>>, vector<1x256xf32>
    %c0_i32 = arith.constant 0 : i32
    %3 = arith.index_cast %c0_i32 : i32 to index
    %c0_4 = arith.constant 0 : index
    %c0_5 = arith.constant 0 : index
    %4 = vector.load %arg1[%3, %c0_4, %c0_5] : memref<2x4x256xf32, #tpu.memory_space<vmem>>, vector<1x4x256xf32>
    %5 = vector.shape_cast %4 : vector<1x4x256xf32> to vector<4x256xf32>
    %cst = arith.constant dense<0.000000e+00> : vector<8x256xf32>
    %6 = tpu.matmul %0, %5, %cst {dimension_numbers = #tpu.dot_dimension_numbers<[1], [0], [0], [1], [0, 0, 1, 1], [], []>, precision = #tpu.contract_precision<fp32>} : vector<8x4xf32>, vector<4x256xf32>, vector<8x256xf32> -> vector<8x256xf32>
    %cst_6 = arith.constant dense<0xFF800000> : vector<8xf32>
    %7 = vector.multi_reduction <maximumf>, %6, %cst_6 [1] : vector<8x256xf32> to vector<8xf32>
    %8 = vector.shape_cast %7 : vector<8xf32> to vector<8x1xf32>
    %9 = vector.broadcast %8 : vector<8x1xf32> to vector<8x256xf32>
    %10 = arith.subf %6, %9 : vector<8x256xf32>
    %11 = math.exp %10 : vector<8x256xf32>
    %cst_7 = arith.constant dense<0.000000e+00> : vector<8xf32>
    %12 = vector.multi_reduction <add>, %11, %cst_7 [1] : vector<8x256xf32> to vector<8xf32>
    %13 = vector.broadcast %1 : vector<1x256xf32> to vector<8x256xf32>
    %14 = arith.mulf %11, %13 : vector<8x256xf32>
    %cst_8 = arith.constant dense<0.000000e+00> : vector<8xf32>
    %15 = vector.multi_reduction <add>, %14, %cst_8 [1] : vector<8x256xf32> to vector<8xf32>
    %16 = vector.broadcast %2 : vector<1x256xf32> to vector<8x256xf32>
    %17 = arith.mulf %11, %16 : vector<8x256xf32>
    %cst_9 = arith.constant dense<0.000000e+00> : vector<8xf32>
    %18 = vector.multi_reduction <add>, %17, %cst_9 [1] : vector<8x256xf32> to vector<8xf32>
    %cst_10 = arith.constant 1.000000e+00 : f32
    %19 = vector.broadcast %cst_10 : f32 to vector<8xf32>
    %20 = arith.divf %19, %12 : vector<8xf32>
    %21 = arith.mulf %15, %20 : vector<8xf32>
    %22 = vector.shape_cast %21 : vector<8xf32> to vector<1x8xf32>
    %23 = arith.mulf %18, %20 : vector<8xf32>
    %24 = vector.shape_cast %23 : vector<8xf32> to vector<1x8xf32>
    %25 = tpu.concatenate %22, %24 in 0 : vector<1x8xf32>, vector<1x8xf32> -> vector<2x8xf32>
    %26 = arith.index_cast %c0_i32 : i32 to index
    %c0_11 = arith.constant 0 : index
    %c0_12 = arith.constant 0 : index
    %27 = vector.load %arg4[%26, %c0_11, %c0_12] : memref<2x2x8xf32, #tpu.memory_space<vmem>>, vector<1x2x8xf32>
    %28 = vector.shape_cast %27 : vector<1x2x8xf32> to vector<2x8xf32>
    %29 = vector.shape_cast %25 : vector<2x8xf32> to vector<1x2x8xf32>
    tpu.vector_store %arg4[%26, %c0_11, %c0_12], %29 {strides = array<i32>} : memref<2x2x8xf32, #tpu.memory_space<vmem>>, vector<1x2x8xf32>,
    %c1_i32 = arith.constant 1 : i32
    %30 = arith.index_cast %c1_i32 : i32 to index
    %c0_13 = arith.constant 0 : index
    %c0_14 = arith.constant 0 : index
    %31 = vector.load %arg1[%30, %c0_13, %c0_14] : memref<2x4x256xf32, #tpu.memory_space<vmem>>, vector<1x4x256xf32>
    %32 = vector.shape_cast %31 : vector<1x4x256xf32> to vector<4x256xf32>
    %cst_15 = arith.constant dense<0.000000e+00> : vector<8x256xf32>
    %33 = tpu.matmul %0, %32, %cst_15 {dimension_numbers = #tpu.dot_dimension_numbers<[1], [0], [0], [1], [0, 0, 1, 1], [], []>, precision = #tpu.contract_precision<fp32>} : vector<8x4xf32>, vector<4x256xf32>, vector<8x256xf32> -> vector<8x256xf32>
    %cst_16 = arith.constant dense<0xFF800000> : vector<8xf32>
    %34 = vector.multi_reduction <maximumf>, %33, %cst_16 [1] : vector<8x256xf32> to vector<8xf32>
    %35 = vector.shape_cast %34 : vector<8xf32> to vector<8x1xf32>
    %36 = vector.broadcast %35 : vector<8x1xf32> to vector<8x256xf32>
    %37 = arith.subf %33, %36 : vector<8x256xf32>
    %38 = math.exp %37 : vector<8x256xf32>
    %cst_17 = arith.constant dense<0.000000e+00> : vector<8xf32>
    %39 = vector.multi_reduction <add>, %38, %cst_17 [1] : vector<8x256xf32> to vector<8xf32>
    %40 = vector.broadcast %1 : vector<1x256xf32> to vector<8x256xf32>
    %41 = arith.mulf %38, %40 : vector<8x256xf32>
    %cst_18 = arith.constant dense<0.000000e+00> : vector<8xf32>
    %42 = vector.multi_reduction <add>, %41, %cst_18 [1] : vector<8x256xf32> to vector<8xf32>
    %43 = vector.broadcast %2 : vector<1x256xf32> to vector<8x256xf32>
    %44 = arith.mulf %38, %43 : vector<8x256xf32>
    %cst_19 = arith.constant dense<0.000000e+00> : vector<8xf32>
    %45 = vector.multi_reduction <add>, %44, %cst_19 [1] : vector<8x256xf32> to vector<8xf32>
    %cst_20 = arith.constant 1.000000e+00 : f32
    %46 = vector.broadcast %cst_20 : f32 to vector<8xf32>
    %47 = arith.divf %46, %39 : vector<8xf32>
    %48 = arith.mulf %42, %47 : vector<8xf32>
    %49 = vector.shape_cast %48 : vector<8xf32> to vector<1x8xf32>
    %50 = arith.mulf %45, %47 : vector<8xf32>
    %51 = vector.shape_cast %50 : vector<8xf32> to vector<1x8xf32>
    %52 = tpu.concatenate %49, %51 in 0 : vector<1x8xf32>, vector<1x8xf32> -> vector<2x8xf32>
    %53 = arith.index_cast %c1_i32 : i32 to index
    %c0_21 = arith.constant 0 : index
    %c0_22 = arith.constant 0 : index
    %54 = vector.load %arg4[%53, %c0_21, %c0_22] : memref<2x2x8xf32, #tpu.memory_space<vmem>>, vector<1x2x8xf32>
    %55 = vector.shape_cast %54 : vector<1x2x8xf32> to vector<2x8xf32>
    %56 = vector.shape_cast %52 : vector<2x8xf32> to vector<1x2x8xf32>
    tpu.vector_store %arg4[%53, %c0_21, %c0_22], %56 {strides = array<i32>} : memref<2x2x8xf32, #tpu.memory_space<vmem>>, vector<1x2x8xf32>,
    %c2_i32 = arith.constant 2 : i32
    return
  }
  func.func @transform_0(%arg0: i32) -> (i32, i32, i32) {
    %c0_i32 = arith.constant 0 : i32
    %c0_i32_0 = arith.constant 0 : i32
    %c0_i32_1 = arith.constant 0 : i32
    return %arg0, %c0_i32, %c0_i32_0 : i32, i32, i32
  }
  func.func @transform_1(%arg0: i32) -> (i32, i32) {
    %c0_i32 = arith.constant 0 : i32
    %c0_i32_0 = arith.constant 0 : i32
    %c0_i32_1 = arith.constant 0 : i32
    return %c0_i32, %c0_i32_0 : i32, i32
  }
  func.func @transform_2(%arg0: i32) -> (i32, i32) {
    %c0_i32 = arith.constant 0 : i32
    %c0_i32_0 = arith.constant 0 : i32
    %c0_i32_1 = arith.constant 0 : i32
    return %c0_i32, %c0_i32_0 : i32, i32
  }
  func.func @transform_3(%arg0: i32) -> (i32, i32, i32) {
    %c0_i32 = arith.constant 0 : i32
    %c0_i32_0 = arith.constant 0 : i32
    %c0_i32_1 = arith.constant 0 : i32
    return %arg0, %c0_i32, %c0_i32_0 : i32, i32, i32
  }
}

</mosaic_0001>

<bundles_post_ra>
// kernel: spatial_softmax.1
= control target key start
LH: loop header
LB: loop body
LE: loop exit
PB: predicated region body
PF: predicated region fallthrough
CT: control target
= control target key end

     0   :  { %vm24_vm0 = vcmask 31744   ;;  %s882_s0 = inlined_call_operand.vmem [shape: f32[2,4,256], index: 0, kind: input, shape index: {}]   ;;  %s883_s1 = inlined_call_operand.vmem [shape: f32[8,4], index: 1, kind: input, shape index: {}]   ;;  %s884_s2 = inlined_call_operand.vmem [shape: f32[2,256], index: 2, kind: input, shape index: {}]   ;;  %s885_s3 = inlined_call_operand.hbm [shape: f32[2,2,8], index: 3, kind: output, shape index: {}]  }
   0x1   :  { %v19_v0 = vld [vmem:[%s882_s0] sm:$0xff] }
   0x2   :  { %v15_v1 = vld [vmem:[%s883_s1] sm:$0xff]  ;;  %21 = vst [vmem:[#allocation1] ss:$2 sm:$0xff] %v19_v0 }
   0x3   :  { %v26_v2 = vsel %vm24_vm0, %v15_v1, 0 }
   0x4   :  { %8 = vsyncpa [#allocation3], 0  ;;  %v826_v3 = vand.u32 4294901760, %v26_v2  ;;  %vm28_vm1 = vcmask 1043456   ;;  %v755_v6 = vld [vmem:[%s882_s0 + $0x8] sm:$0xff]  ;;  %vm382_vm6 = vcmask 1040384  }
   0x5   :  { %vm384_vm7 = vcmask 58368   ;;  %s742_s23 = sshll.u32 %s885_s3, 4  ;;  %s798_s24 = smov 32   ;;  %s743_s23 = int_to_ptr.hbm [resolvable:$true] %s742_s23 }
   0x6   :  { %v829_v4 = vsub.f32 %v26_v2, %v826_v3  ;;  %s799_s25 = smov 2  }
   0x8   :  { %v832_v5 = vand.u32 4294901760, %v829_v4 }
   0x9   :  { %v22_v7 = vld.sshfl [vmem:[#allocation1] sm:$0xff pattern:$0x75316420]  ;;  %v23_v9 = vld.sshfl [vmem:[#allocation1 + $0x8] sm:$0xff pattern:$0x75316420] }
   0xa   :  { %v53_v8 = vsub.f32 %v829_v4, %v832_v5  ;;  %v29_v10 = vsel %vm28_vm1, %v22_v7, 0  ;;  %v31_v11 = vsel %vm28_vm1, %v23_v9, 0  ;;  %389 = vst [vmem:[#allocation1] ss:$2 sm:$0xff] %v755_v6 }
   0xb   :  { %v48_v12 = vand.u32 4294901760, %v29_v10  ;;  %v194_v14 = vand.u32 4294901760, %v31_v11 }
   0xc   :  { %v841_v13 = vand.u32 4294901760, %v53_v8 }
   0xd   :  { %v75_v15 = vsub.f32 %v29_v10, %v48_v12  ;;  %49 = vmatpush.msra.mxu0 %v48_v12  ;;  %125 = vmatpush.msra.mxu3 %v48_v12  ;;  %v221_v16 = vsub.f32 %v31_v11, %v194_v14 }
   0xe   :  { %55 = vmatmul.f32.vlgmr.msra.gmra.mxu0 %v841_v13  ;;  %129 = vmatmul.f32.vlgmr.msra.gmra.mxu3 %v832_v5 }
   0xf   :  { %102 = vmatpush.msra.mxu2 %v75_v15  ;;  %v76_v17 = vand.u32 4294901760, %v75_v15  ;;  %v222_v18 = vand.u32 4294901760, %v221_v16 }
  0x10   :  { %105 = vmatmul.f32.vlgmr.msra.gmra.mxu2 %v829_v4 }
  0x11   :  { %195 = vmatpush.msrb.mxu2 %v194_v14  ;;  %v77_v19 = vsub.f32 %v75_v15, %v76_v17  ;;  %151 = vmatpush.msrb.mxu0 %v76_v17  ;;  %v223_v20 = vsub.f32 %v221_v16, %v222_v18  ;;  %v390_v21 = vld.sshfl [vmem:[#allocation1] sm:$0xff pattern:$0x75316420]  ;;  %v391_v22 = vld.sshfl [vmem:[#allocation1 + $0x8] sm:$0xff pattern:$0x75316420] }
  0x12   :  { %v392_v23 = vsel %vm28_vm1, %v390_v21, 0  ;;  %v394_v24 = vsel %vm28_vm1, %v391_v22, 0 }
  0x13   :  { %297 = vmatpush.msra.mxu2 %v222_v18  ;;  %248 = vmatpush.msra.mxu0 %v221_v16  ;;  %v78_v25 = vand.u32 4294901760, %v77_v19  ;;  %v224_v26 = vand.u32 4294901760, %v223_v20  ;;  %v411_v27 = vand.u32 4294901760, %v392_v23  ;;  %v557_v28 = vand.u32 4294901760, %v394_v24 }
  0x15   :  { %79 = vmatpush.msra.mxu1 %v78_v25  ;;  %225 = vmatpush.msrb.mxu3 %v224_v26  ;;  %v438_v29 = vsub.f32 %v392_v23, %v411_v27  ;;  %v584_v30 = vsub.f32 %v394_v24, %v557_v28  ;;  %v16_v24 = vld [vmem:[%s884_s2] ss:$2 sm:$0x3] }
  0x16   :  { %81 = vmatmul.f32.vlgmr.msra.gmra.mxu1 %v826_v3  ;;  %153 = vmatmul.f32.vlgmr.msrb.gmra.mxu0 %v826_v3  ;;  %v338_v25 = vperm.slane %v16_v24, 0  ;;  %v339_v26 = vperm.slane %v16_v24, 1 }
  0x17   :  { %173 = vmatpush.msrb.mxu1 %v48_v12  ;;  %227 = vmatmul.f32.vlgmr.msrb.gmra.mxu3 %v826_v3  ;;  %v439_v31 = vand.u32 4294901760, %v438_v29  ;;  %v585_v32 = vand.u32 4294901760, %v584_v30 }
  0x18   :  { %201 = vmatmul.f32.vlgmr.msrb.gmra.mxu2 %v841_v13  ;;  %319 = vmatpush.msra.mxu3 %v194_v14 }
  0x19   :  { %271 = vmatpush.msra.mxu1 %v194_v14  ;;  %465 = vmatpush.msrb.mxu2 %v438_v29  ;;  %v440_v33 = vsub.f32 %v438_v29, %v439_v31  ;;  %v586_v34 = vsub.f32 %v584_v30, %v585_v32 }
  0x1a   :  { %412 = vmatpush.msrb.mxu0 %v411_v27  ;;  %488 = vmatpush.msrb.mxu3 %v411_v27 }
  0x1b   :  { %v441_v35 = vand.u32 4294901760, %v440_v33  ;;  %v587_v36 = vand.u32 4294901760, %v586_v34 }
  0x1e   :  { %175 = vmatmul.f32.vlgmr.msrb.gmra.mxu1 %v826_v3  ;;  %251 = vmatmul.f32.vlgmr.msra.gmra.mxu0 %v829_v4 }
  0x1f   :  { %321 = vmatmul.f32.vlgmr.msra.gmra.mxu3 %v826_v3  ;;  %442 = vmatpush.msrb.mxu1 %v441_v35 }
  0x20   :  { %299 = vmatmul.f32.vlgmr.msra.gmra.mxu2 %v826_v3  ;;  %514 = vmatpush.msra.mxu0 %v439_v31 }
  0x21   :  { %558 = vmatpush.msra.mxu2 %v557_v28  ;;  %588 = vmatpush.msra.mxu3 %v587_v36 }
  0x26   :  { %275 = vmatmul.f32.vlgmr.msra.gmra.mxu1 %v832_v5  ;;  %418 = vmatmul.f32.vlgmr.msrb.gmra.mxu0 %v841_v13 }
  0x27   :  { %492 = vmatmul.f32.vlgmr.msrb.gmra.mxu3 %v832_v5  ;;  %536 = vmatpush.msra.mxu1 %v411_v27 }
  0x28   :  { %468 = vmatmul.f32.vlgmr.msrb.gmra.mxu2 %v829_v4  ;;  %611 = vmatpush.msrb.mxu0 %v584_v30  ;;  %v754_v30 = vld [vmem:[%s884_s2 + $0x1] ss:$2 sm:$0x3]  ;;  %s797_s2 = smov [#allocation2]  }
  0x29   :  { %660 = vmatpush.msrb.mxu2 %v585_v32  ;;  %682 = vmatpush.msrb.mxu3 %v557_v28  ;;  %v348_v34 = vperm.slane %v754_v30, 0  ;;  %v349_v35 = vperm.slane %v754_v30, 1  ;;  %s740_s20 = sshll.u32 %s797_s2, 4  ;;  %s741_s20 = int_to_ptr.vmem [resolvable:$true] %s740_s20 }
  0x2e   :  { %444 = vmatmul.f32.vlgmr.msrb.gmra.mxu1 %v826_v3  ;;  %516 = vmatmul.f32.vlgmr.msra.gmra.mxu0 %v826_v3 }
  0x2f   :  { %590 = vmatmul.f32.vlgmr.msra.gmra.mxu3 %v826_v3  ;;  %634 = vmatpush.msrb.mxu1 %v557_v28 }
  0x30   :  { %564 = vmatmul.f32.vlgmr.msra.gmra.mxu2 %v841_v13 }
  0x36   :  { %538 = vmatmul.f32.vlgmr.msra.gmra.mxu1 %v826_v3  ;;  %614 = vmatmul.f32.vlgmr.msrb.gmra.mxu0 %v829_v4 }
  0x37   :  { %684 = vmatmul.f32.vlgmr.msrb.gmra.mxu3 %v826_v3 }
  0x38   :  { %662 = vmatmul.f32.vlgmr.msrb.gmra.mxu2 %v826_v3 }
  0x3e   :  { %638 = vmatmul.f32.vlgmr.msrb.gmra.mxu1 %v832_v5 }
  0x8b   :  { %v56_v37 = vpop.f32.mrf.mxu0 }
  0x91   :  { %v130_v38 = vpop.f32.mrf.mxu3 }
  0x93   :  { %v82_v39 = vpop.f32.mrf.mxu1  ;;  %v106_v40 = vpop.f32.mrf.mxu2 }
  0x94   :  { %v154_v41 = vpop.f32.mrf.mxu0  ;;  %v83_v42 = vadd.f32 %v82_v39, %v56_v37 }
  0x96   :  { %v107_v46 = vadd.f32 %v106_v40, %v83_v42 }
  0x98   :  { %v131_v49 = vadd.f32 %v130_v38, %v107_v46 }
  0x9a   :  { %v228_v43 = vpop.f32.mrf.mxu3  ;;  %v155_v54 = vadd.f32 %v154_v41, %v131_v49 }
  0x9b   :  { %v176_v44 = vpop.f32.mrf.mxu1  ;;  %v202_v45 = vpop.f32.mrf.mxu2 }
  0x9c   :  { %v252_v47 = vpop.f32.mrf.mxu0  ;;  %v229_v48 = vadd.f32 %v228_v43, %v202_v45  ;;  %v177_v58 = vadd.f32 %v176_v44, %v155_v54 }
  0x9e   :  { %v253_v50 = vadd.f32 %v252_v47, %v229_v48 }
  0xa2   :  { %v322_v51 = vpop.f32.mrf.mxu3 }
  0xa3   :  { %v276_v52 = vpop.f32.mrf.mxu1  ;;  %v300_v53 = vpop.f32.mrf.mxu2 }
  0xa4   :  { %v277_v55 = vadd.f32 %v276_v52, %v253_v50  ;;  %v419_v56 = vpop.f32.mrf.mxu0 }
  0xa6   :  { %v301_v57 = vadd.f32 %v300_v53, %v277_v55 }
  0xa8   :  { %v323_v59 = vadd.f32 %v322_v51, %v301_v57 }
  0xaa   :  { %v325_v60 = vmax.f32 %v177_v58, %v323_v59  ;;  %v493_v61 = vpop.f32.mrf.mxu3 }
  0xab   :  { %v445_v62 = vpop.f32.mrf.mxu1  ;;  %v469_v63 = vpop.f32.mrf.mxu2 }
  0xac   :  { %326 = vmax.xlane.f32.xlu0 %v325_v60  ;;  %v517_v0 = vpop.f32.mrf.mxu0  ;;  %v446_v1 = vadd.f32 %v445_v62, %v419_v56 }
  0xae   :  { %v470_v5 = vadd.f32 %v469_v63, %v446_v1 }
  0xb0   :  { %v494_v8 = vadd.f32 %v493_v61, %v470_v5 }
  0xb2   :  { %v591_v2 = vpop.f32.mrf.mxu3  ;;  %v518_v12 = vadd.f32 %v517_v0, %v494_v8 }
  0xb3   :  { %v539_v3 = vpop.f32.mrf.mxu1  ;;  %v565_v4 = vpop.f32.mrf.mxu2 }
  0xb4   :  { %v592_v6 = vadd.f32 %v591_v2, %v565_v4  ;;  %v615_v7 = vpop.f32.mrf.mxu0  ;;  %v540_v16 = vadd.f32 %v539_v3, %v518_v12 }
  0xb6   :  { %v616_v9 = vadd.f32 %v615_v7, %v592_v6 }
  0xba   :  { %v685_v14 = vpop.f32.mrf.mxu3 }
  0xbb   :  { %v639_v10 = vpop.f32.mrf.mxu1  ;;  %v663_v11 = vpop.f32.mrf.mxu2 }
  0xbc   :  { %v640_v13 = vadd.f32 %v639_v10, %v616_v9 }
  0xbe   :  { %v664_v15 = vadd.f32 %v663_v11, %v640_v13 }
  0xc0   :  { %v686_v17 = vadd.f32 %v685_v14, %v664_v15 }
  0xc2   :  { %v688_v18 = vmax.f32 %v540_v16, %v686_v17 }
  0xc4   :  { %689 = vmax.xlane.f32.xlu0 %v688_v18 }
 0x11f   :  { %v327_v19 = vpop.xlane.xlu0 %326 }
 0x120   :  { %v328_v20 = vsub.f32 %v177_v58, %v327_v19  ;;  %v329_v21 = vsub.f32 %v323_v59, %v327_v19  ;;  %v375_v59 = vlaneseq }
 0x122   :  { %v330_v22 = vmul.f32 1.442695, %v328_v20  ;;  %v332_v23 = vmul.f32 1.442695, %v329_v21  ;;  %v376_v0 = vand.u32 127, %v375_v59 }
 0x124   :  { %759 = vpow2.f32 %v330_v22 }
 0x125   :  { %761 = vpow2.f32 %v332_v23 }
 0x12a   :  { %v760_v27 = vpop.eup %759 }
 0x12b   :  { %v762_v28 = vpop.eup %761  ;;  %v342_v29 = vmul.f32 %v760_v27, %v338_v25  ;;  %v352_v36 = vmul.f32 %v760_v27, %v348_v34 }
 0x12c   :  { %v334_v31 = vadd.f32 %v762_v28, %v760_v27  ;;  %v343_v32 = vmul.f32 %v762_v28, %v339_v26  ;;  %v353_v37 = vmul.f32 %v762_v28, %v349_v35 }
 0x12e   :  { %335 = vadd.xlane.f32.xlu1 %v334_v31  ;;  %v344_v33 = vadd.f32 %v343_v32, %v342_v29  ;;  %v354_v38 = vadd.f32 %v353_v37, %v352_v36 }
 0x130   :  { %345 = vadd.xlane.f32.xlu2 %v344_v33 }
 0x137   :  { %v690_v39 = vpop.xlane.xlu0 %689 }
 0x138   :  { %355 = vadd.xlane.f32.xlu2 %v354_v38  ;;  %v691_v40 = vsub.f32 %v540_v16, %v690_v39  ;;  %v692_v41 = vsub.f32 %v686_v17, %v690_v39 }
 0x13a   :  { %v693_v42 = vmul.f32 1.442695, %v691_v40  ;;  %v695_v43 = vmul.f32 1.442695, %v692_v41 }
 0x13c   :  { %763 = vpow2.f32 %v693_v42 }
 0x13d   :  { %765 = vpow2.f32 %v695_v43 }
 0x142   :  { %v764_v44 = vpop.eup %763 }
 0x143   :  { %v766_v45 = vpop.eup %765  ;;  %v700_v46 = vmul.f32 %v764_v44, %v338_v25  ;;  %v705_v50 = vmul.f32 %v764_v44, %v348_v34 }
 0x144   :  { %v697_v47 = vadd.f32 %v766_v45, %v764_v44  ;;  %v701_v48 = vmul.f32 %v766_v45, %v339_v26  ;;  %v706_v51 = vmul.f32 %v766_v45, %v349_v35 }
 0x146   :  { %698 = vadd.xlane.f32.xlu1 %v697_v47  ;;  %v702_v49 = vadd.f32 %v701_v48, %v700_v46  ;;  %v707_v52 = vadd.f32 %v706_v51, %v705_v50 }
 0x148   :  { %703 = vadd.xlane.f32.xlu0 %v702_v49 }
 0x14e   :  { %708 = vadd.xlane.f32.xlu1 %v707_v52 }
 0x1a1   :  { %v336_v53 = vpop.xlane.xlu1 %335 }
 0x1a2   :  { %767 = vrcp.f32 %v336_v53  ;;  %v368_v58 = vand.u32 2147483648, %v336_v53  ;;  %v366_v61 = vand.u32 2147483647, %v336_v53  ;;  %vm362_vm3 = vweird.f32 %v336_v53 }
 0x1a3   :  { %v346_v55 = vpop.xlane.xlu2 %345 }
 0x1a4   :  { %v369_v63 = vor.u32 1.1754944e-38, %v368_v58  ;;  %vm367_vm5 = vcmp.eq.f32.partialorder %v366_v61, 8.507059e+37 }
 0x1a8   :  { %v768_v54 = vpop.eup %767 }
 0x1a9   :  { %v358_v56 = vmul.f32 %v768_v54, %v336_v53  ;;  %vm363_vm2 = vweird.f32 %v768_v54 }
 0x1aa   :  { %vm364_vm4 = vmor %vm362_vm3, %vm363_vm2 }
 0x1ab   :  { %v359_v57 = vsub.f32 1.0, %v358_v56  ;;  %v356_v3 = vpop.xlane.xlu2 %355 }
 0x1ad   :  { %v360_v60 = vmul.f32 %v768_v54, %v359_v57 }
 0x1af   :  { %v361_v62 = vadd.f32 %v768_v54, %v360_v60 }
 0x1b1   :  { %v365_v1 = vsel %vm364_vm4, %v768_v54, %v361_v62 }
 0x1b2   :  { %v370_v2 = vsel %vm367_vm5, %v369_v63, %v365_v1 }
 0x1b3   :  { %v372_v4 = vmul.f32 %v370_v2, %v346_v55  ;;  %v373_v5 = vmul.f32 %v370_v2, %v356_v3 }
 0x1b5   :  { %v377_v6 = vperm.slane %v372_v4, %v376_v0  ;;  %v380_v7 = vperm.slane %v373_v5, %v376_v0 }
 0x1b7   :  { %v383_v8 = vsel %vm382_vm6, %v377_v6, %v380_v7 }
 0x1b8   :  { %385 = vst.msk [vmem:[#allocation2] sm:$0x3] %vm384_vm7, %v383_v8 }
 0x1b9   :  { %v699_v9 = vpop.xlane.xlu1 %698 }
 0x1ba   :  { %769 = vrcp.f32 %v699_v9  ;;  %v721_v13 = vand.u32 2147483648, %v699_v9  ;;  %v719_v15 = vand.u32 2147483647, %v699_v9  ;;  %vm715_vm9 = vweird.f32 %v699_v9 }
 0x1bb   :  { %v704_v19 = vpop.xlane.xlu0 %703 }
 0x1bc   :  { %v722_v17 = vor.u32 1.1754944e-38, %v721_v13  ;;  %vm720_vm11 = vcmp.eq.f32.partialorder %v719_v15, 8.507059e+37 }
 0x1c0   :  { %v770_v10 = vpop.eup %769 }
 0x1c1   :  { %v711_v11 = vmul.f32 %v770_v10, %v699_v9  ;;  %vm716_vm8 = vweird.f32 %v770_v10  ;;  %v709_v21 = vpop.xlane.xlu1 %708 }
 0x1c2   :  { %vm717_vm10 = vmor %vm715_vm9, %vm716_vm8 }
 0x1c3   :  { %v712_v12 = vsub.f32 1.0, %v711_v11 }
 0x1c5   :  { %v713_v14 = vmul.f32 %v770_v10, %v712_v12 }
 0x1c7   :  { %v714_v16 = vadd.f32 %v770_v10, %v713_v14 }
 0x1c9   :  { %v718_v18 = vsel %vm717_vm10, %v770_v10, %v714_v16 }
 0x1ca   :  { %v723_v20 = vsel %vm720_vm11, %v722_v17, %v718_v18 }
 0x1cb   :  { %v725_v22 = vmul.f32 %v723_v20, %v704_v19  ;;  %v726_v23 = vmul.f32 %v723_v20, %v709_v21 }
 0x1cd   :  { %v728_v24 = vperm.slane %v725_v22, %v376_v0  ;;  %v731_v25 = vperm.slane %v726_v23, %v376_v0 }
 0x1cf   :  { %v733_v26 = vsel %vm382_vm6, %v728_v24, %v731_v25 }
 0x1d0   :  { %735 = vst.msk [vmem:[#allocation2 + $0x2] sm:$0x3] %vm384_vm7, %v733_v26 }
 0x1d1   :  { %748 = dma.vmem_to_hbm [thread:$0]  %s741_s20, 64, %s743_s23, [#allocation3], %s798_s24, %s798_s24, %s799_s25  }
 0x1d2   :  { %795 = dma.done.wait [#allocation3], 64  }
 0x1d3   :  { %796 = vsyncadd [#allocation3], 4294967232 }
 0x1d4   :  { %753 = vsyncpa [#allocation3], 1 }

</bundles_post_ra>
